<compile_context>
chip_gen: v5e
topology: v5e:2x2
jax: 0.10.0
libtpu: 0.0.40
codegen_flags: <defaults>
</compile_context>

<pallas_src>
import math
import functools

import jax
import jax.numpy as jnp
from jax.experimental import pallas as pl
from jax.experimental.pallas import tpu as pltpu


def transformer_block_kernel(x_ref, g1_ref, be1_ref, wqkv_ref, wproj_ref,
                             g2_ref, be2_ref, w1_ref, bf1_ref, w2_ref, bf2_ref,
                             o_ref, qkv_scratch, y_scratch, *, num_heads):
    eps = 1e-5
    Bb, T, E = x_ref.shape
    D = E // num_heads
    M = Bb * T

    x = x_ref[...].reshape(M, E)                       # (M, E) f32

    # ---------- LayerNorm 1 (f32) ----------
    mu = jnp.mean(x, axis=-1, keepdims=True)
    var = jnp.mean(jnp.square(x - mu), axis=-1, keepdims=True)
    h = (x - mu) * jax.lax.rsqrt(var + eps)
    h = h * g1_ref[0] + be1_ref[0]

    # ---------- QKV projection (bf16 MXU, f32 accumulate), M = Bb*T rows ----------
    # 1/sqrt(E) is pre-folded into the Q columns of Wqkv (wrapper-side).
    qkv = jnp.dot(h.astype(jnp.bfloat16), wqkv_ref[...],
                  preferred_element_type=jnp.float32)  # (M, 3E) f32
    qkv_scratch[...] = qkv.astype(jnp.bfloat16)        # single downcast, kept in bf16

    # causal mask: built once, reused for every sequence / head
    row = jax.lax.broadcasted_iota(jnp.int32, (T, T), 0)
    col = jax.lax.broadcasted_iota(jnp.int32, (T, T), 1)
    causal = col <= row

    # ---------- attention: fori over sequences, heads unrolled -----------------
    # TODO(synk): for large T, tile the K/V axis (flash-style online softmax)
    # instead of materializing a (T, T) f32 score matrix per head.
    # TODO(synk): if D < 128, per-head lane slices are masked/partial; a
    # head-batched (H, T, D) relayout would avoid per-head lane shuffles.
    def seq_body(b, carry):
        r0 = pl.multiple_of(b * T, T)
        seq_qkv = qkv_scratch[pl.ds(r0, T), :]         # (T, 3E) bf16
        for hd in range(num_heads):
            c0 = hd * D
            qh = seq_qkv[:, 0 * E + c0:0 * E + c0 + D]
            kh = seq_qkv[:, 1 * E + c0:1 * E + c0 + D]
            vh = seq_qkv[:, 2 * E + c0:2 * E + c0 + D]
            # s[i, j] = q_i . k_j  (contract last dims, no explicit transpose)
            s = jax.lax.dot_general(qh, kh, (((1,), (1,)), ((), ())),
                                    preferred_element_type=jnp.float32)  # (T, T)
            s = jnp.where(causal, s, -jnp.inf)
            s = s - jnp.max(s, axis=-1, keepdims=True)
            p = jnp.exp(s)
            # diagonal is always unmasked -> sum > 0, approx reciprocal is safe
            p = p * pl.reciprocal(jnp.sum(p, axis=-1, keepdims=True), approx=True)
            yh = jnp.dot(p.astype(jnp.bfloat16), vh,
                         preferred_element_type=jnp.float32)             # (T, D)
            y_scratch[pl.ds(r0, T), pl.ds(c0, D)] = yh.astype(jnp.bfloat16)
        return carry

    jax.lax.fori_loop(0, Bb, seq_body, 0)

    # ---------- single output projection: (M, E) @ (E, E), K = E fills the MXU ----
    attn = jnp.dot(y_scratch[...], wproj_ref[...],
                   preferred_element_type=jnp.float32)                   # (M, E)

    x1 = x + attn                                      # residual 1, f32

    # ---------- LayerNorm 2 (f32) ----------
    mu2 = jnp.mean(x1, axis=-1, keepdims=True)
    var2 = jnp.mean(jnp.square(x1 - mu2), axis=-1, keepdims=True)
    h2 = (x1 - mu2) * jax.lax.rsqrt(var2 + eps)
    h2 = h2 * g2_ref[0] + be2_ref[0]

    # ---------- FFN: Linear(E, E//4) -> ReLU -> Linear(E//4, E), M rows ----------
    ff1 = jnp.dot(h2.astype(jnp.bfloat16), w1_ref[...],
                  preferred_element_type=jnp.float32) + bf1_ref[0]
    ff1 = jnp.maximum(ff1, 0.0)
    ff2 = jnp.dot(ff1.astype(jnp.bfloat16), w2_ref[...],
                  preferred_element_type=jnp.float32) + bf2_ref[0]

    o_ref[...] = (x1 + ff2).reshape(Bb, T, E)          # residual 2


def _pick_block_b(B, T, target_rows=512):
    """Pack sequences per grid step (M = Bb*T rows for the MXU), but keep at
    least 2 grid steps so v7x's second TensorCore isn't idle."""
    cap = max(1, B // 2)
    bb = max(1, min(cap, max(1, target_rows // max(T, 1))))
    while B % bb != 0:
        bb -= 1
    return bb


def prepare_weights(params, n_embed):
    """One-time weight prep: bf16 cast + fold 1/sqrt(E) into the Q columns."""
    E = n_embed
    inv_norm = 1.0 / math.sqrt(E)   # MultiHeadAttention._norm = sqrt(out_features) = sqrt(n_embed)
    wqkv = params["wqkv_t"]
    wqkv = jnp.concatenate([wqkv[:, :E] * inv_norm, wqkv[:, E:]], axis=-1)
    bf16 = jnp.bfloat16
    return {
        "wqkv": wqkv.astype(bf16),
        "wproj": params["wproj_t"].astype(bf16),
        "w1": params["w1_t"].astype(bf16),
        "w2": params["w2_t"].astype(bf16),
    }


def transformer_block(x, params, prep, *, num_heads, block_b=None):
    B, T, E = x.shape
    H4 = E // 4
    Bb = _pick_block_b(B, T) if block_b is None else block_b
    assert B % Bb == 0 and E % num_heads == 0

    kernel = functools.partial(transformer_block_kernel, num_heads=num_heads)

    def const_spec(shape):
        # whole-array block, constant across the batch grid; single-buffered
        # (the block index never changes, so no double-buffer VMEM is needed).
        return pl.BlockSpec(shape, lambda b: (0, 0), pipeline_mode=pl.Buffered(1))

    in_specs = [
        pl.BlockSpec((Bb, T, E), lambda b: (b, 0, 0)),   # x
        const_spec((1, E)), const_spec((1, E)),          # ln1 gamma, beta (f32)
        const_spec((E, 3 * E)),                          # Wqkv^T (bf16, Q pre-scaled)
        const_spec((E, E)),                              # Wproj^T (bf16)
        const_spec((1, E)), const_spec((1, E)),          # ln2 gamma, beta (f32)
        const_spec((E, H4)), const_spec((1, H4)),        # ffn W1^T (bf16), b1 (f32)
        const_spec((H4, E)), const_spec((1, E)),         # ffn W2^T (bf16), b2 (f32)
    ]

    # TODO(synk): accept/emit bf16 activations at this boundary if the
    # surrounding model allows; halves x/o HBM traffic and VMEM blocks.
    return pl.pallas_call(
        kernel,
        out_shape=jax.ShapeDtypeStruct((B, T, E), jnp.float32),
        grid=(B // Bb,),
        in_specs=in_specs,
        out_specs=pl.BlockSpec((Bb, T, E), lambda b: (b, 0, 0)),
        scratch_shapes=[pltpu.VMEM((Bb * T, 3 * E), jnp.bfloat16),   # qkv (bf16)
                        pltpu.VMEM((Bb * T, E), jnp.bfloat16)],      # per-head outputs
        compiler_params=pltpu.CompilerParams(
            dimension_semantics=("parallel",),           # independent batch blocks
            vmem_limit_bytes=64 * 1024 * 1024),
    )(x, params["g1"], params["be1"], prep["wqkv"], prep["wproj"],
      params["g2"], params["be2"], prep["w1"], params["bf1"], prep["w2"], params["bf2"])


def reference_block(x, params, *, num_heads):
    """Pure-JAX f32 reference mirroring the PyTorch forward (dropout=0)."""
    B, T, E = x.shape
    D = E // num_heads
    eps = 1e-5

    def ln(z, g, b):
        mu = jnp.mean(z, -1, keepdims=True)
        var = jnp.mean(jnp.square(z - mu), -1, keepdims=True)
        return (z - mu) / jnp.sqrt(var + eps) * g + b

    h = ln(x, params["g1"][0], params["be1"][0])
    qkv = h @ params["wqkv_t"]
    q, k, v = jnp.split(qkv, 3, axis=-1)
    q = q.reshape(B, T, num_heads, D).transpose(0, 2, 1, 3)
    k = k.reshape(B, T, num_heads, D).transpose(0, 2, 1, 3)
    v = v.reshape(B, T, num_heads, D).transpose(0, 2, 1, 3)
    att = jnp.einsum("bhqd,bhkd->bhqk", q, k) / math.sqrt(E)
    mask = jnp.tril(jnp.ones((T, T), bool))
    att = jnp.where(mask, att, -jnp.inf)
    att = jax.nn.softmax(att, axis=-1)
    y = jnp.einsum("bhqk,bhkd->bhqd", att, v).transpose(0, 2, 1, 3).reshape(B, T, E)
    x1 = x + y @ params["wproj_t"]
    h2 = ln(x1, params["g2"][0], params["be2"][0])
    ff = jnp.maximum(h2 @ params["w1_t"] + params["bf1"][0], 0.0) @ params["w2_t"] + params["bf2"][0]
    return x1 + ff


def init_params(key, n_embed):
    E = n_embed
    H4 = E // 4
    ks = jax.random.split(key, 8)

    def lin(k, fan_in, shape):
        bound = 1.0 / math.sqrt(fan_in)
        return jax.random.uniform(k, shape, jnp.float32, -bound, bound)

    return {
        "g1": jnp.ones((1, E), jnp.float32),
        "be1": jnp.zeros((1, E), jnp.float32),
        "wqkv_t": lin(ks[0], E, (E, 3 * E)),
        "wproj_t": lin(ks[1], E, (E, E)),
        "g2": jnp.ones((1, E), jnp.float32),
        "be2": jnp.zeros((1, E), jnp.float32),
        "w1_t": lin(ks[2], E, (E, H4)),
        "bf1": lin(ks[3], E, (1, H4)),
        "w2_t": lin(ks[4], H4, (H4, E)),
        "bf2": lin(ks[5], H4, (1, E)),
    }


if __name__ == "__main__":
    B, T, E, H = 2, 8, 32, 4   # batch, seq (== block_size), n_embed, n_head
    key = jax.random.PRNGKey(0)
    kx, kp = jax.random.split(key)
    x = jax.random.normal(kx, (B, T, E), jnp.float32)
    params = init_params(kp, E)
    prep = prepare_weights(params, E)   # one-time bf16 cast + Q-scale fold

    out = transformer_block(x, params, prep, num_heads=H)
    out = jax.block_until_ready(out)

    ref = reference_block(x, params, num_heads=H)
    assert out.shape == (B, T, E)
    # bf16 MXU matmuls (f32 accumulation) + approx reciprocal -> looser tolerance
    assert jnp.allclose(out, ref, rtol=3e-2, atol=3e-2), "mismatch vs JAX reference"

    print("KERNEL_OK")
</pallas_src>

<mosaic_0001>
module attributes {stable_mosaic.version = 11 : i64} {
  func.func @transformer_block_kernel(%arg0: i32, %arg1: memref<1x8x32xf32, #tpu.memory_space<vmem>>, %arg2: memref<1x32xf32, #tpu.memory_space<vmem>>, %arg3: memref<1x32xf32, #tpu.memory_space<vmem>>, %arg4: memref<32x96xbf16, #tpu.memory_space<vmem>>, %arg5: memref<32x32xbf16, #tpu.memory_space<vmem>>, %arg6: memref<1x32xf32, #tpu.memory_space<vmem>>, %arg7: memref<1x32xf32, #tpu.memory_space<vmem>>, %arg8: memref<32x8xbf16, #tpu.memory_space<vmem>>, %arg9: memref<1x8xf32, #tpu.memory_space<vmem>>, %arg10: memref<8x32xbf16, #tpu.memory_space<vmem>>, %arg11: memref<1x32xf32, #tpu.memory_space<vmem>>, %arg12: memref<1x8x32xf32, #tpu.memory_space<vmem>>, %arg13: memref<8x96xbf16, #tpu.memory_space<vmem>>, %arg14: memref<8x32xbf16, #tpu.memory_space<vmem>>) attributes {dimension_semantics = [#tpu.dimension_semantics<parallel>], iteration_bounds = array<i64: 2>, scalar_prefetch = 0 : i64, scratch_operands = 2 : i64, tpu.core_type = #tpu.core_type<tc>, window_params = [{transform_indices = @transform_0, window_bounds = array<i64: 1, 8, 32>}, {pipeline_mode = #tpu.pipeline_mode<synchronous>, transform_indices = @transform_1, window_bounds = array<i64: 1, 32>}, {pipeline_mode = #tpu.pipeline_mode<synchronous>, transform_indices = @transform_2, window_bounds = array<i64: 1, 32>}, {pipeline_mode = #tpu.pipeline_mode<synchronous>, transform_indices = @transform_3, window_bounds = array<i64: 32, 96>}, {pipeline_mode = #tpu.pipeline_mode<synchronous>, transform_indices = @transform_4, window_bounds = array<i64: 32, 32>}, {pipeline_mode = #tpu.pipeline_mode<synchronous>, transform_indices = @transform_5, window_bounds = array<i64: 1, 32>}, {pipeline_mode = #tpu.pipeline_mode<synchronous>, transform_indices = @transform_6, window_bounds = array<i64: 1, 32>}, {pipeline_mode = #tpu.pipeline_mode<synchronous>, transform_indices = @transform_7, window_bounds = array<i64: 32, 8>}, {pipeline_mode = #tpu.pipeline_mode<synchronous>, transform_indices = @transform_8, window_bounds = array<i64: 1, 8>}, {pipeline_mode = #tpu.pipeline_mode<synchronous>, transform_indices = @transform_9, window_bounds = array<i64: 8, 32>}, {pipeline_mode = #tpu.pipeline_mode<synchronous>, transform_indices = @transform_10, window_bounds = array<i64: 1, 32>}, {transform_indices = @transform_11, window_bounds = array<i64: 1, 8, 32>}]} {
    %c0 = arith.constant 0 : index
    %c0_0 = arith.constant 0 : index
    %c0_1 = arith.constant 0 : index
    %0 = vector.load %arg1[%c0, %c0_0, %c0_1] : memref<1x8x32xf32, #tpu.memory_space<vmem>>, vector<1x8x32xf32>
    %1 = vector.shape_cast %0 : vector<1x8x32xf32> to vector<8x32xf32>
    %cst = arith.constant dense<0.000000e+00> : vector<8xf32>
    %2 = vector.multi_reduction <add>, %1, %cst [1] : vector<8x32xf32> to vector<8xf32>
    %3 = vector.shape_cast %2 : vector<8xf32> to vector<8x1xf32>
    %cst_2 = arith.constant 3.200000e+01 : f32
    %4 = vector.broadcast %cst_2 : f32 to vector<8x1xf32>
    %5 = arith.divf %3, %4 : vector<8x1xf32>
    %6 = vector.broadcast %5 : vector<8x1xf32> to vector<8x32xf32>
    %7 = arith.subf %1, %6 : vector<8x32xf32>
    %8 = arith.mulf %7, %7 : vector<8x32xf32>
    %cst_3 = arith.constant dense<0.000000e+00> : vector<8xf32>
    %9 = vector.multi_reduction <add>, %8, %cst_3 [1] : vector<8x32xf32> to vector<8xf32>
    %10 = vector.shape_cast %9 : vector<8xf32> to vector<8x1xf32>
    %cst_4 = arith.constant 3.200000e+01 : f32
    %11 = vector.broadcast %cst_4 : f32 to vector<8x1xf32>
    %12 = arith.divf %10, %11 : vector<8x1xf32>
    %13 = vector.broadcast %5 : vector<8x1xf32> to vector<8x32xf32>
    %14 = arith.subf %1, %13 : vector<8x32xf32>
    %cst_5 = arith.constant 9.99999974E-6 : f32
    %15 = vector.broadcast %cst_5 : f32 to vector<8x1xf32>
    %16 = arith.addf %12, %15 : vector<8x1xf32>
    %17 = math.rsqrt %16 : vector<8x1xf32>
    %18 = vector.broadcast %17 : vector<8x1xf32> to vector<8x32xf32>
    %19 = arith.mulf %14, %18 : vector<8x32xf32>
    %c0_6 = arith.constant 0 : index
    %c0_7 = arith.constant 0 : index
    %20 = vector.load %arg2[%c0_6, %c0_7] : memref<1x32xf32, #tpu.memory_space<vmem>>, vector<1x32xf32>
    %21 = vector.shape_cast %20 : vector<1x32xf32> to vector<32xf32>
    %22 = vector.shape_cast %21 : vector<32xf32> to vector<1x32xf32>
    %23 = vector.broadcast %22 : vector<1x32xf32> to vector<8x32xf32>
    %24 = arith.mulf %19, %23 : vector<8x32xf32>
    %c0_8 = arith.constant 0 : index
    %c0_9 = arith.constant 0 : index
    %25 = vector.load %arg3[%c0_8, %c0_9] : memref<1x32xf32, #tpu.memory_space<vmem>>, vector<1x32xf32>
    %26 = vector.shape_cast %25 : vector<1x32xf32> to vector<32xf32>
    %27 = vector.shape_cast %26 : vector<32xf32> to vector<1x32xf32>
    %28 = vector.broadcast %27 : vector<1x32xf32> to vector<8x32xf32>
    %29 = arith.addf %24, %28 : vector<8x32xf32>
    %30 = arith.truncf %29 : vector<8x32xf32> to vector<8x32xbf16>
    %c0_10 = arith.constant 0 : index
    %c0_11 = arith.constant 0 : index
    %31 = vector.load %arg4[%c0_10, %c0_11] : memref<32x96xbf16, #tpu.memory_space<vmem>>, vector<32x96xbf16>
    %cst_12 = arith.constant dense<0.000000e+00> : vector<8x96xf32>
    %32 = tpu.matmul %30, %31, %cst_12 {dimension_numbers = #tpu.dot_dimension_numbers<[1], [0], [0], [1], [0, 0, 1, 1], [], []>} : vector<8x32xbf16>, vector<32x96xbf16>, vector<8x96xf32> -> vector<8x96xf32>
    %33 = arith.truncf %32 : vector<8x96xf32> to vector<8x96xbf16>
    %c0_13 = arith.constant 0 : index
    %c0_14 = arith.constant 0 : index
    %34 = vector.load %arg13[%c0_13, %c0_14] : memref<8x96xbf16, #tpu.memory_space<vmem>>, vector<8x96xbf16>
    tpu.vector_store %arg13[%c0_13, %c0_14], %33 {strides = array<i32>} : memref<8x96xbf16, #tpu.memory_space<vmem>>, vector<8x96xbf16>,
    %35 = tpu.iota {dimensions = array<i32: 0>} : vector<8x8xi32>
    %36 = tpu.iota {dimensions = array<i32: 1>} : vector<8x8xi32>
    %37 = arith.cmpi sle, %36, %35 : vector<8x8xi32>
    %c0_i32 = arith.constant 0 : i32
    %c8_i32 = arith.constant 8 : i32
    %38 = arith.muli %c0_i32, %c8_i32 : i32
    %39 = tpu.assume_multiple %38, 8 : i32
    %40 = arith.index_cast %39 : i32 to index
    %c0_15 = arith.constant 0 : index
    %41 = vector.load %arg13[%40, %c0_15] : memref<8x96xbf16, #tpu.memory_space<vmem>>, vector<8x96xbf16>
    %42 = vector.extract_strided_slice %41 {offsets = [0, 0], sizes = [8, 8], strides = [1, 1]} : vector<8x96xbf16> to vector<8x8xbf16>
    %43 = vector.extract_strided_slice %41 {offsets = [0, 32], sizes = [8, 8], strides = [1, 1]} : vector<8x96xbf16> to vector<8x8xbf16>
    %44 = vector.extract_strided_slice %41 {offsets = [0, 64], sizes = [8, 8], strides = [1, 1]} : vector<8x96xbf16> to vector<8x8xbf16>
    %cst_16 = arith.constant dense<0.000000e+00> : vector<8x8xf32>
    %45 = tpu.matmul %42, %43, %cst_16 {dimension_numbers = #tpu.dot_dimension_numbers<[1], [1], [0], [0], [0, 0, 1, 0], [], []>} : vector<8x8xbf16>, vector<8x8xbf16>, vector<8x8xf32> -> vector<8x8xf32>
    %cst_17 = arith.constant 0xFF800000 : f32
    %46 = vector.broadcast %cst_17 : f32 to vector<8x8xf32>
    %47 = arith.select %37, %45, %46 : vector<8x8xi1>, vector<8x8xf32>
    %cst_18 = arith.constant dense<0xFF800000> : vector<8xf32>
    %48 = vector.multi_reduction <maximumf>, %47, %cst_18 [1] : vector<8x8xf32> to vector<8xf32>
    %49 = vector.shape_cast %48 : vector<8xf32> to vector<8x1xf32>
    %50 = vector.broadcast %49 : vector<8x1xf32> to vector<8x8xf32>
    %51 = arith.subf %47, %50 : vector<8x8xf32>
    %52 = math.exp %51 : vector<8x8xf32>
    %cst_19 = arith.constant dense<0.000000e+00> : vector<8xf32>
    %53 = vector.multi_reduction <add>, %52, %cst_19 [1] : vector<8x8xf32> to vector<8xf32>
    %54 = vector.shape_cast %53 : vector<8xf32> to vector<8x1xf32>
    %55 = tpu.reciprocal %54 {approx = true} : vector<8x1xf32> -> vector<8x1xf32>
    %56 = vector.broadcast %55 : vector<8x1xf32> to vector<8x8xf32>
    %57 = arith.mulf %52, %56 : vector<8x8xf32>
    %58 = arith.truncf %57 : vector<8x8xf32> to vector<8x8xbf16>
    %cst_20 = arith.constant dense<0.000000e+00> : vector<8x8xf32>
    %59 = tpu.matmul %58, %44, %cst_20 {dimension_numbers = #tpu.dot_dimension_numbers<[1], [0], [0], [1], [0, 0, 1, 1], [], []>} : vector<8x8xbf16>, vector<8x8xbf16>, vector<8x8xf32> -> vector<8x8xf32>
    %60 = arith.truncf %59 : vector<8x8xf32> to vector<8x8xbf16>
    %61 = arith.index_cast %39 : i32 to index
    %c0_21 = arith.constant 0 : index
    %62 = vector.load %arg14[%61, %c0_21] : memref<8x32xbf16, #tpu.memory_space<vmem>>, vector<8x8xbf16>
    tpu.vector_store %arg14[%61, %c0_21], %60 {strides = array<i32>} : memref<8x32xbf16, #tpu.memory_space<vmem>>, vector<8x8xbf16>,
    %63 = vector.extract_strided_slice %41 {offsets = [0, 8], sizes = [8, 8], strides = [1, 1]} : vector<8x96xbf16> to vector<8x8xbf16>
    %64 = vector.extract_strided_slice %41 {offsets = [0, 40], sizes = [8, 8], strides = [1, 1]} : vector<8x96xbf16> to vector<8x8xbf16>
    %65 = vector.extract_strided_slice %41 {offsets = [0, 72], sizes = [8, 8], strides = [1, 1]} : vector<8x96xbf16> to vector<8x8xbf16>
    %cst_22 = arith.constant dense<0.000000e+00> : vector<8x8xf32>
    %66 = tpu.matmul %63, %64, %cst_22 {dimension_numbers = #tpu.dot_dimension_numbers<[1], [1], [0], [0], [0, 0, 1, 0], [], []>} : vector<8x8xbf16>, vector<8x8xbf16>, vector<8x8xf32> -> vector<8x8xf32>
    %cst_23 = arith.constant 0xFF800000 : f32
    %67 = vector.broadcast %cst_23 : f32 to vector<8x8xf32>
    %68 = arith.select %37, %66, %67 : vector<8x8xi1>, vector<8x8xf32>
    %cst_24 = arith.constant dense<0xFF800000> : vector<8xf32>
    %69 = vector.multi_reduction <maximumf>, %68, %cst_24 [1] : vector<8x8xf32> to vector<8xf32>
    %70 = vector.shape_cast %69 : vector<8xf32> to vector<8x1xf32>
    %71 = vector.broadcast %70 : vector<8x1xf32> to vector<8x8xf32>
    %72 = arith.subf %68, %71 : vector<8x8xf32>
    %73 = math.exp %72 : vector<8x8xf32>
    %cst_25 = arith.constant dense<0.000000e+00> : vector<8xf32>
    %74 = vector.multi_reduction <add>, %73, %cst_25 [1] : vector<8x8xf32> to vector<8xf32>
    %75 = vector.shape_cast %74 : vector<8xf32> to vector<8x1xf32>
    %76 = tpu.reciprocal %75 {approx = true} : vector<8x1xf32> -> vector<8x1xf32>
    %77 = vector.broadcast %76 : vector<8x1xf32> to vector<8x8xf32>
    %78 = arith.mulf %73, %77 : vector<8x8xf32>
    %79 = arith.truncf %78 : vector<8x8xf32> to vector<8x8xbf16>
    %cst_26 = arith.constant dense<0.000000e+00> : vector<8x8xf32>
    %80 = tpu.matmul %79, %65, %cst_26 {dimension_numbers = #tpu.dot_dimension_numbers<[1], [0], [0], [1], [0, 0, 1, 1], [], []>} : vector<8x8xbf16>, vector<8x8xbf16>, vector<8x8xf32> -> vector<8x8xf32>
    %81 = arith.truncf %80 : vector<8x8xf32> to vector<8x8xbf16>
    %82 = arith.index_cast %39 : i32 to index
    %c8 = arith.constant 8 : index
    %83 = vector.load %arg14[%82, %c8] : memref<8x32xbf16, #tpu.memory_space<vmem>>, vector<8x8xbf16>
    tpu.vector_store %arg14[%82, %c8], %81 {strides = array<i32>} : memref<8x32xbf16, #tpu.memory_space<vmem>>, vector<8x8xbf16>,
    %84 = vector.extract_strided_slice %41 {offsets = [0, 16], sizes = [8, 8], strides = [1, 1]} : vector<8x96xbf16> to vector<8x8xbf16>
    %85 = vector.extract_strided_slice %41 {offsets = [0, 48], sizes = [8, 8], strides = [1, 1]} : vector<8x96xbf16> to vector<8x8xbf16>
    %86 = vector.extract_strided_slice %41 {offsets = [0, 80], sizes = [8, 8], strides = [1, 1]} : vector<8x96xbf16> to vector<8x8xbf16>
    %cst_27 = arith.constant dense<0.000000e+00> : vector<8x8xf32>
    %87 = tpu.matmul %84, %85, %cst_27 {dimension_numbers = #tpu.dot_dimension_numbers<[1], [1], [0], [0], [0, 0, 1, 0], [], []>} : vector<8x8xbf16>, vector<8x8xbf16>, vector<8x8xf32> -> vector<8x8xf32>
    %cst_28 = arith.constant 0xFF800000 : f32
    %88 = vector.broadcast %cst_28 : f32 to vector<8x8xf32>
    %89 = arith.select %37, %87, %88 : vector<8x8xi1>, vector<8x8xf32>
    %cst_29 = arith.constant dense<0xFF800000> : vector<8xf32>
    %90 = vector.multi_reduction <maximumf>, %89, %cst_29 [1] : vector<8x8xf32> to vector<8xf32>
    %91 = vector.shape_cast %90 : vector<8xf32> to vector<8x1xf32>
    %92 = vector.broadcast %91 : vector<8x1xf32> to vector<8x8xf32>
    %93 = arith.subf %89, %92 : vector<8x8xf32>
    %94 = math.exp %93 : vector<8x8xf32>
    %cst_30 = arith.constant dense<0.000000e+00> : vector<8xf32>
    %95 = vector.multi_reduction <add>, %94, %cst_30 [1] : vector<8x8xf32> to vector<8xf32>
    %96 = vector.shape_cast %95 : vector<8xf32> to vector<8x1xf32>
    %97 = tpu.reciprocal %96 {approx = true} : vector<8x1xf32> -> vector<8x1xf32>
    %98 = vector.broadcast %97 : vector<8x1xf32> to vector<8x8xf32>
    %99 = arith.mulf %94, %98 : vector<8x8xf32>
    %100 = arith.truncf %99 : vector<8x8xf32> to vector<8x8xbf16>
    %cst_31 = arith.constant dense<0.000000e+00> : vector<8x8xf32>
    %101 = tpu.matmul %100, %86, %cst_31 {dimension_numbers = #tpu.dot_dimension_numbers<[1], [0], [0], [1], [0, 0, 1, 1], [], []>} : vector<8x8xbf16>, vector<8x8xbf16>, vector<8x8xf32> -> vector<8x8xf32>
    %102 = arith.truncf %101 : vector<8x8xf32> to vector<8x8xbf16>
    %103 = arith.index_cast %39 : i32 to index
    %c16 = arith.constant 16 : index
    %104 = vector.load %arg14[%103, %c16] : memref<8x32xbf16, #tpu.memory_space<vmem>>, vector<8x8xbf16>
    tpu.vector_store %arg14[%103, %c16], %102 {strides = array<i32>} : memref<8x32xbf16, #tpu.memory_space<vmem>>, vector<8x8xbf16>,
    %105 = vector.extract_strided_slice %41 {offsets = [0, 24], sizes = [8, 8], strides = [1, 1]} : vector<8x96xbf16> to vector<8x8xbf16>
    %106 = vector.extract_strided_slice %41 {offsets = [0, 56], sizes = [8, 8], strides = [1, 1]} : vector<8x96xbf16> to vector<8x8xbf16>
    %107 = vector.extract_strided_slice %41 {offsets = [0, 88], sizes = [8, 8], strides = [1, 1]} : vector<8x96xbf16> to vector<8x8xbf16>
    %cst_32 = arith.constant dense<0.000000e+00> : vector<8x8xf32>
    %108 = tpu.matmul %105, %106, %cst_32 {dimension_numbers = #tpu.dot_dimension_numbers<[1], [1], [0], [0], [0, 0, 1, 0], [], []>} : vector<8x8xbf16>, vector<8x8xbf16>, vector<8x8xf32> -> vector<8x8xf32>
    %cst_33 = arith.constant 0xFF800000 : f32
    %109 = vector.broadcast %cst_33 : f32 to vector<8x8xf32>
    %110 = arith.select %37, %108, %109 : vector<8x8xi1>, vector<8x8xf32>
    %cst_34 = arith.constant dense<0xFF800000> : vector<8xf32>
    %111 = vector.multi_reduction <maximumf>, %110, %cst_34 [1] : vector<8x8xf32> to vector<8xf32>
    %112 = vector.shape_cast %111 : vector<8xf32> to vector<8x1xf32>
    %113 = vector.broadcast %112 : vector<8x1xf32> to vector<8x8xf32>
    %114 = arith.subf %110, %113 : vector<8x8xf32>
    %115 = math.exp %114 : vector<8x8xf32>
    %cst_35 = arith.constant dense<0.000000e+00> : vector<8xf32>
    %116 = vector.multi_reduction <add>, %115, %cst_35 [1] : vector<8x8xf32> to vector<8xf32>
    %117 = vector.shape_cast %116 : vector<8xf32> to vector<8x1xf32>
    %118 = tpu.reciprocal %117 {approx = true} : vector<8x1xf32> -> vector<8x1xf32>
    %119 = vector.broadcast %118 : vector<8x1xf32> to vector<8x8xf32>
    %120 = arith.mulf %115, %119 : vector<8x8xf32>
    %121 = arith.truncf %120 : vector<8x8xf32> to vector<8x8xbf16>
    %cst_36 = arith.constant dense<0.000000e+00> : vector<8x8xf32>
    %122 = tpu.matmul %121, %107, %cst_36 {dimension_numbers = #tpu.dot_dimension_numbers<[1], [0], [0], [1], [0, 0, 1, 1], [], []>} : vector<8x8xbf16>, vector<8x8xbf16>, vector<8x8xf32> -> vector<8x8xf32>
    %123 = arith.truncf %122 : vector<8x8xf32> to vector<8x8xbf16>
    %124 = arith.index_cast %39 : i32 to index
    %c24 = arith.constant 24 : index
    %125 = vector.load %arg14[%124, %c24] : memref<8x32xbf16, #tpu.memory_space<vmem>>, vector<8x8xbf16>
    tpu.vector_store %arg14[%124, %c24], %123 {strides = array<i32>} : memref<8x32xbf16, #tpu.memory_space<vmem>>, vector<8x8xbf16>,
    %c1_i32 = arith.constant 1 : i32
    %c0_37 = arith.constant 0 : index
    %c0_38 = arith.constant 0 : index
    %126 = vector.load %arg14[%c0_37, %c0_38] : memref<8x32xbf16, #tpu.memory_space<vmem>>, vector<8x32xbf16>
    %c0_39 = arith.constant 0 : index
    %c0_40 = arith.constant 0 : index
    %127 = vector.load %arg5[%c0_39, %c0_40] : memref<32x32xbf16, #tpu.memory_space<vmem>>, vector<32x32xbf16>
    %cst_41 = arith.constant dense<0.000000e+00> : vector<8x32xf32>
    %128 = tpu.matmul %126, %127, %cst_41 {dimension_numbers = #tpu.dot_dimension_numbers<[1], [0], [0], [1], [0, 0, 1, 1], [], []>} : vector<8x32xbf16>, vector<32x32xbf16>, vector<8x32xf32> -> vector<8x32xf32>
    %129 = arith.addf %1, %128 : vector<8x32xf32>
    %cst_42 = arith.constant dense<0.000000e+00> : vector<8xf32>
    %130 = vector.multi_reduction <add>, %129, %cst_42 [1] : vector<8x32xf32> to vector<8xf32>
    %131 = vector.shape_cast %130 : vector<8xf32> to vector<8x1xf32>
    %cst_43 = arith.constant 3.200000e+01 : f32
    %132 = vector.broadcast %cst_43 : f32 to vector<8x1xf32>
    %133 = arith.divf %131, %132 : vector<8x1xf32>
    %134 = vector.broadcast %133 : vector<8x1xf32> to vector<8x32xf32>
    %135 = arith.subf %129, %134 : vector<8x32xf32>
    %136 = arith.mulf %135, %135 : vector<8x32xf32>
    %cst_44 = arith.constant dense<0.000000e+00> : vector<8xf32>
    %137 = vector.multi_reduction <add>, %136, %cst_44 [1] : vector<8x32xf32> to vector<8xf32>
    %138 = vector.shape_cast %137 : vector<8xf32> to vector<8x1xf32>
    %cst_45 = arith.constant 3.200000e+01 : f32
    %139 = vector.broadcast %cst_45 : f32 to vector<8x1xf32>
    %140 = arith.divf %138, %139 : vector<8x1xf32>
    %141 = vector.broadcast %133 : vector<8x1xf32> to vector<8x32xf32>
    %142 = arith.subf %129, %141 : vector<8x32xf32>
    %cst_46 = arith.constant 9.99999974E-6 : f32
    %143 = vector.broadcast %cst_46 : f32 to vector<8x1xf32>
    %144 = arith.addf %140, %143 : vector<8x1xf32>
    %145 = math.rsqrt %144 : vector<8x1xf32>
    %146 = vector.broadcast %145 : vector<8x1xf32> to vector<8x32xf32>
    %147 = arith.mulf %142, %146 : vector<8x32xf32>
    %c0_47 = arith.constant 0 : index
    %c0_48 = arith.constant 0 : index
    %148 = vector.load %arg6[%c0_47, %c0_48] : memref<1x32xf32, #tpu.memory_space<vmem>>, vector<1x32xf32>
    %149 = vector.shape_cast %148 : vector<1x32xf32> to vector<32xf32>
    %150 = vector.shape_cast %149 : vector<32xf32> to vector<1x32xf32>
    %151 = vector.broadcast %150 : vector<1x32xf32> to vector<8x32xf32>
    %152 = arith.mulf %147, %151 : vector<8x32xf32>
    %c0_49 = arith.constant 0 : index
    %c0_50 = arith.constant 0 : index
    %153 = vector.load %arg7[%c0_49, %c0_50] : memref<1x32xf32, #tpu.memory_space<vmem>>, vector<1x32xf32>
    %154 = vector.shape_cast %153 : vector<1x32xf32> to vector<32xf32>
    %155 = vector.shape_cast %154 : vector<32xf32> to vector<1x32xf32>
    %156 = vector.broadcast %155 : vector<1x32xf32> to vector<8x32xf32>
    %157 = arith.addf %152, %156 : vector<8x32xf32>
    %158 = arith.truncf %157 : vector<8x32xf32> to vector<8x32xbf16>
    %c0_51 = arith.constant 0 : index
    %c0_52 = arith.constant 0 : index
    %159 = vector.load %arg8[%c0_51, %c0_52] : memref<32x8xbf16, #tpu.memory_space<vmem>>, vector<32x8xbf16>
    %cst_53 = arith.constant dense<0.000000e+00> : vector<8x8xf32>
    %160 = tpu.matmul %158, %159, %cst_53 {dimension_numbers = #tpu.dot_dimension_numbers<[1], [0], [0], [1], [0, 0, 1, 1], [], []>} : vector<8x32xbf16>, vector<32x8xbf16>, vector<8x8xf32> -> vector<8x8xf32>
    %c0_54 = arith.constant 0 : index
    %c0_55 = arith.constant 0 : index
    %161 = vector.load %arg9[%c0_54, %c0_55] : memref<1x8xf32, #tpu.memory_space<vmem>>, vector<1x8xf32>
    %162 = vector.shape_cast %161 : vector<1x8xf32> to vector<8xf32>
    %163 = vector.shape_cast %162 : vector<8xf32> to vector<1x8xf32>
    %164 = vector.broadcast %163 : vector<1x8xf32> to vector<8x8xf32>
    %165 = arith.addf %160, %164 : vector<8x8xf32>
    %cst_56 = arith.constant 0.000000e+00 : f32
    %166 = vector.broadcast %cst_56 : f32 to vector<8x8xf32>
    %167 = arith.maximumf %165, %166 : vector<8x8xf32>
    %168 = arith.truncf %167 : vector<8x8xf32> to vector<8x8xbf16>
    %c0_57 = arith.constant 0 : index
    %c0_58 = arith.constant 0 : index
    %169 = vector.load %arg10[%c0_57, %c0_58] : memref<8x32xbf16, #tpu.memory_space<vmem>>, vector<8x32xbf16>
    %cst_59 = arith.constant dense<0.000000e+00> : vector<8x32xf32>
    %170 = tpu.matmul %168, %169, %cst_59 {dimension_numbers = #tpu.dot_dimension_numbers<[1], [0], [0], [1], [0, 0, 1, 1], [], []>} : vector<8x8xbf16>, vector<8x32xbf16>, vector<8x32xf32> -> vector<8x32xf32>
    %c0_60 = arith.constant 0 : index
    %c0_61 = arith.constant 0 : index
    %171 = vector.load %arg11[%c0_60, %c0_61] : memref<1x32xf32, #tpu.memory_space<vmem>>, vector<1x32xf32>
    %172 = vector.shape_cast %171 : vector<1x32xf32> to vector<32xf32>
    %173 = vector.shape_cast %172 : vector<32xf32> to vector<1x32xf32>
    %174 = vector.broadcast %173 : vector<1x32xf32> to vector<8x32xf32>
    %175 = arith.addf %170, %174 : vector<8x32xf32>
    %176 = arith.addf %129, %175 : vector<8x32xf32>
    %177 = vector.shape_cast %176 : vector<8x32xf32> to vector<1x8x32xf32>
    %c0_62 = arith.constant 0 : index
    %c0_63 = arith.constant 0 : index
    %c0_64 = arith.constant 0 : index
    %178 = vector.load %arg12[%c0_62, %c0_63, %c0_64] : memref<1x8x32xf32, #tpu.memory_space<vmem>>, vector<1x8x32xf32>
    tpu.vector_store %arg12[%c0_62, %c0_63, %c0_64], %177 {strides = array<i32>} : memref<1x8x32xf32, #tpu.memory_space<vmem>>, vector<1x8x32xf32>,
    return
  }
  func.func @transform_0(%arg0: i32) -> (i32, i32, i32) {
    %c0_i32 = arith.constant 0 : i32
    %c0_i32_0 = arith.constant 0 : i32
    %c0_i32_1 = arith.constant 0 : i32
    return %arg0, %c0_i32, %c0_i32_0 : i32, i32, i32
  }
  func.func @transform_1(%arg0: i32) -> (i32, i32) {
    %c0_i32 = arith.constant 0 : i32
    %c0_i32_0 = arith.constant 0 : i32
    %c0_i32_1 = arith.constant 0 : i32
    return %c0_i32, %c0_i32_0 : i32, i32
  }
  func.func @transform_2(%arg0: i32) -> (i32, i32) {
    %c0_i32 = arith.constant 0 : i32
    %c0_i32_0 = arith.constant 0 : i32
    %c0_i32_1 = arith.constant 0 : i32
    return %c0_i32, %c0_i32_0 : i32, i32
  }
  func.func @transform_3(%arg0: i32) -> (i32, i32) {
    %c0_i32 = arith.constant 0 : i32
    %c0_i32_0 = arith.constant 0 : i32
    %c0_i32_1 = arith.constant 0 : i32
    return %c0_i32, %c0_i32_0 : i32, i32
  }
  func.func @transform_4(%arg0: i32) -> (i32, i32) {
    %c0_i32 = arith.constant 0 : i32
    %c0_i32_0 = arith.constant 0 : i32
    %c0_i32_1 = arith.constant 0 : i32
    return %c0_i32, %c0_i32_0 : i32, i32
  }
  func.func @transform_5(%arg0: i32) -> (i32, i32) {
    %c0_i32 = arith.constant 0 : i32
    %c0_i32_0 = arith.constant 0 : i32
    %c0_i32_1 = arith.constant 0 : i32
    return %c0_i32, %c0_i32_0 : i32, i32
  }
  func.func @transform_6(%arg0: i32) -> (i32, i32) {
    %c0_i32 = arith.constant 0 : i32
    %c0_i32_0 = arith.constant 0 : i32
    %c0_i32_1 = arith.constant 0 : i32
    return %c0_i32, %c0_i32_0 : i32, i32
  }
  func.func @transform_7(%arg0: i32) -> (i32, i32) {
    %c0_i32 = arith.constant 0 : i32
    %c0_i32_0 = arith.constant 0 : i32
    %c0_i32_1 = arith.constant 0 : i32
    return %c0_i32, %c0_i32_0 : i32, i32
  }
  func.func @transform_8(%arg0: i32) -> (i32, i32) {
    %c0_i32 = arith.constant 0 : i32
    %c0_i32_0 = arith.constant 0 : i32
    %c0_i32_1 = arith.constant 0 : i32
    return %c0_i32, %c0_i32_0 : i32, i32
  }
  func.func @transform_9(%arg0: i32) -> (i32, i32) {
    %c0_i32 = arith.constant 0 : i32
    %c0_i32_0 = arith.constant 0 : i32
    %c0_i32_1 = arith.constant 0 : i32
    return %c0_i32, %c0_i32_0 : i32, i32
  }
  func.func @transform_10(%arg0: i32) -> (i32, i32) {
    %c0_i32 = arith.constant 0 : i32
    %c0_i32_0 = arith.constant 0 : i32
    %c0_i32_1 = arith.constant 0 : i32
    return %c0_i32, %c0_i32_0 : i32, i32
  }
  func.func @transform_11(%arg0: i32) -> (i32, i32, i32) {
    %c0_i32 = arith.constant 0 : i32
    %c0_i32_0 = arith.constant 0 : i32
    %c0_i32_1 = arith.constant 0 : i32
    return %arg0, %c0_i32, %c0_i32_0 : i32, i32, i32
  }
}

</mosaic_0001>

<bundles_post_ra>
// kernel: tpu_custom_call.1
= control target key start
LH: loop header
LB: loop body
LE: loop exit
PB: predicated region body
PF: predicated region fallthrough
CT: control target
= control target key end

     0   :  { %s1708_s0 = inlined_call_operand.vmem [shape: f32[2,8,32], index: 0, kind: input, shape index: {}]   ;;  %s1709_s1 = inlined_call_operand.hbm [shape: f32[1,32], index: 1, kind: input, shape index: {}]   ;;  %s1710_s2 = inlined_call_operand.vmem [shape: f32[1,32], index: 2, kind: input, shape index: {}]   ;;  %s1711_s3 = inlined_call_operand.hbm [shape: bf16[32,96], index: 3, kind: input, shape index: {}]   ;;  %s1712_s4 = inlined_call_operand.hbm [shape: bf16[32,32], index: 4, kind: input, shape index: {}]   ;;  %s1713_s5 = inlined_call_operand.vmem [shape: f32[1,32], index: 5, kind: input, shape index: {}]   ;;  %s1714_s6 = inlined_call_operand.hbm [shape: f32[1,32], index: 6, kind: input, shape index: {}]   ;;  %s1715_s7 = inlined_call_operand.vmem [shape: bf16[32,8], index: 7, kind: input, shape index: {}]   ;;  %s1716_s8 = inlined_call_operand.vmem [shape: f32[1,8], index: 8, kind: input, shape index: {}]   ;;  %s1717_s9 = inlined_call_operand.vmem [shape: bf16[8,32], index: 9, kind: input, shape index: {}]   ;;  %s1718_s10 = inlined_call_operand.vmem [shape: f32[1,32], index: 10, kind: input, shape index: {}]   ;;  %s1719_s11 = inlined_call_operand.hbm [shape: f32[2,8,32], index: 11, kind: output, shape index: {}]  }
   0x1   :  { %1725 = sst [smem:[#allocation22_spill]] %s1709_s1 }
   0x2   :  { %1726 = sst [smem:[#allocation23_spill]] %s1711_s3 }
   0x3   :  { %16 = vsyncpa [#allocation5], 0 }
   0x4   :  { %17 = vsyncpa [#allocation8], 0 }
   0x5   :  { %18 = vsyncpa [#allocation11], 0 }
   0x6   :  { %19 = vsyncpa [#allocation6], 0 }
   0x7   :  { %21 = vsyncpa [#allocation6 + $0x1], 0  ;;  %s1493_s17 = smov 0   ;;  %s1495_s18 = smov 0  }
   0x8   :  { %s1497_s19 = smov 0   ;;  %s1499_s20 = smov 0  }
   0x9 LB: > { %1727 = sst [smem:[#allocation17_spill]] %s1398_s17  ;;  %s1514_s21 = sadd.s32 4294967295, %s1410_s20   ;;  %s1410_s20 = sphi %s1499_s20, %s1740_s20   ;;  %s1406_s19 = sphi %s1497_s19, %s1745_s19   ;;  %s1402_s18 = sphi %s1495_s18, %s1744_s18   ;;  %s1398_s17 = sphi %s1493_s17, %s1743_s17  }
   0xa   : > { %1728 = sst [smem:[#allocation18_spill]] %s1406_s19  ;;  %s1031_s22 = sadd.s32 4294967294, %s1410_s20  }
   0xb   : > { %s1518_s23 = sadd.s32 1, %s1410_s20   ;;  %s270_s24 = sadd.s32 1, %s1406_s19 }
   0xc   : > { %1729 = sst [smem:[#allocation19_spill]] %s1518_s23  ;;  %s267_s25 = ssub.s32 %s1410_s20, %s1518_s23 }
   0xd   : > { %p280_p0 = scmp.ne.s32.totalorder %s1406_s19, %s1402_s18  ;;  %p268_p1 = scmp.eq.s32.totalorder %s267_s25, 0 }
   0xe   : > { %p281_p2 = scmp.eq.s32.totalorder %s1514_s21, 1  ;;  %p286_p3 = scmp.ne.s32.totalorder %s1402_s18, %s1398_s17 }
   0xf   : > { %p287_p4 = scmp.eq.s32.totalorder %s1031_s22, 1  ;;  %p1032_p7 = scmp.ge.s32.totalorder %s1410_s20, 1 }
  0x10   : > { %s1529_s26 = scalar_select %p268_p1, %s1406_s19, %s270_s24  }
  0x11   : > { %p1531_p5 = por %p281_p2, %p280_p0  ;;  %p1535_p6 = por %p287_p4, %p286_p3 }
  0x12   : > { %1730 = sst [smem:[#allocation20_spill]] %s1529_s26  ;;  %p294_p8 = scmp.lt.s32.totalorder %s1410_s20, 3 }
  0x13   : > { %s1732_s28 = scalar_select %p1535_p6, 1, 0 }
  0x14   : > { %p1126_p9 = scmp.eq.s32.totalorder %s1514_s21, 0  ;;  %p1542_p10 = pnand %p1032_p7, %p294_p8 }
  0x15   : > { %1733 = sst [smem:[#allocation21_spill]] %s1732_s28  ;;  %s1412_s14 = smov [#allocation7]  }
  0x16   : > { %s1735_s3 = sld [smem:[#allocation23_spill]]  ;;  %p1109_p11 = pneg %p1542_p10 }
  0x17   : > { %s322_s15 = sshll.u32 %s1412_s14, 4  ;;  %s1737_s1 = sld [smem:[#allocation22_spill]]  ;;  %s323_s15 = int_to_ptr.vmem [resolvable:$true] %s322_s15 }
  0x18   : > { %p1553_p12 = pnand %p1126_p9, %p1109_p11  ;;  %s1413_s30 = smov 64  }
  0x19   : > { %s1414_s12 = smov 4   ;;  %s1415_s14 = smov [#allocation4]  }
  0x1a   : > { %s334_s23 = sshll.u32 %s1712_s4, 4  ;;  %s1416_s28 = smov [#allocation9]   ;;  %s335_s23 = int_to_ptr.hbm [resolvable:$true] %s334_s23 }
  0x1b   : > { %s336_s17 = sshll.u32 %s1416_s28, 4  ;;  %s337_s17 = int_to_ptr.vmem [resolvable:$true] %s336_s17 }
  0x1c   : > { %s320_s13 = sshll.u32 %s1735_s3, 4  ;;  %s308_s3 = sshll.u32 %s1415_s14, 4  ;;  %s321_s13 = int_to_ptr.hbm [resolvable:$true] %s320_s13  ;;  %s309_s3 = int_to_ptr.vmem [resolvable:$true] %s308_s3 }
  0x1d   : > { %s306_s25 = sshll.u32 %s1737_s1, 4  ;;  %s352_s1 = sshll.u32 %s1714_s6, 4  ;;  %s307_s25 = int_to_ptr.hbm [resolvable:$true] %s306_s25  ;;  %s353_s1 = int_to_ptr.hbm [resolvable:$true] %s352_s1 }
  0x1e   : > { %1115 = dma.hbm_to_vmem [thread:$0]  (!%p1553_p12), %s321_s13, 256, %s323_s15, [#allocation8], %s1413_s30, %s1413_s30, %s1414_s12  }
  0x1f   : > { %1112 = dma.hbm_to_vmem [thread:$0]  (!%p1553_p12), %s307_s25, 16, %s309_s3, [#allocation5]  }
  0x20   : > { %1118 = dma.hbm_to_vmem [thread:$0]  (!%p1553_p12), %s335_s23, 256, %s337_s17, [#allocation8], %s1413_s30, %s1413_s30, %s1414_s12  }
  0x21   : > { %s1417_s13 = smov [#allocation10]   ;;  %386 = sbr.rel (%p1542_p10) target bundleno = 1926 (0x786), region = 64 }
  0x22   : > { %s354_s15 = sshll.u32 %s1417_s13, 4  ;;  %s355_s15 = int_to_ptr.vmem [resolvable:$true] %s354_s15 }
  0x23   : > { %1121 = dma.hbm_to_vmem [thread:$0]  (!%p1553_p12), %s353_s1, 16, %s355_s15, [#allocation11]  }
  0x26   : > { %1381 = dma.done.wait (%p1126_p9), [#allocation5], 16  }
  0x27   : > { %1383 = vsyncadd (%p1126_p9), [#allocation5], 4294967280 }
  0x28   : > { %1385 = dma.done.wait (%p1126_p9), [#allocation8], 512  }
  0x29   : > { %1387 = vsyncadd (%p1126_p9), [#allocation8], 4294966784 }
  0x2a   : > { %1389 = dma.done.wait (%p1126_p9), [#allocation11], 16  }
  0x2b   : > { %1391 = vsyncadd (%p1126_p9), [#allocation11], 4294967280  ;;  %p441_p13 = scmp.lt.s32.totalorder %s1514_s21, 1  ;;  %vm447_vm0 = vcmask 261120   ;;  %v1418_v2 = vmov 32.0   ;;  %v1086_v14 = vld [vmem:[#allocation7 + $0x8] sm:$0xff]  ;;  %v523_v49 = vlaneseq }
  0x2c   : > { %1194 = vrcp.f32 %v1418_v2  ;;  %513 = vmatpush.bf16.msra.mxu0 %v1086_v14  ;;  %v1085_v15 = vld [vmem:[#allocation7] sm:$0xff]  ;;  %v1188_v25 = vld [vmem:[#allocation4] ss:$0 sm:$0xff]  ;;  %v1189_v28 = vld [vmem:[%s1710_s2] ss:$0 sm:$0xff]  ;;  %vm521_vm5 = vcmask 781312  }
  0x2d   : > { %s442_s1 = scalar_select %p441_p13, %s1514_s21, 1  ;;  %vm534_vm6 = vcmask 64512   ;;  %v524_v50 = vshrl.u32 %v523_v49, 7  ;;  %v526_v51 = vand.u32 127, %v523_v49  ;;  %vm572_vm8 = vcmask 1043456  }
  0x2e   : > { %s1419_s29 = smov 104   ;;  %s1420_s16 = smov 120   ;;  %vm590_vm9 = vcmask 60416   ;;  %vm654_vm10 = vcmask 126016   ;;  %vm718_vm11 = vcmask 191616   ;;  %vm782_vm12 = vcmask 257216  }
  0x2f   : > { %s1044_s3 = sshll.u32 %s442_s1, 3  ;;  %s1421_s25 = smov 96   ;;  %vm527_vm7 = vcmp.le.s32.totalorder %v526_v51, %v524_v50 }
  0x30   : > { %s444_s23 = scalar_lea.vmem %s1708_s0, %s1044_s3  ;;  %514 = vmatpush.bf16.msra.mxu0 %v1085_v15  ;;  %s1422_s30 = smov 72  }
  0x31   : > { %v1593_v0 = vld [vmem:[%s444_s23] sm:$0xff]  ;;  %s1423_s12 = smov 88   ;;  %s1424_s14 = smov 112  }
  0x32   : > { %v448_v1 = vsel %vm447_vm0, %v1593_v0, 0.0  ;;  %v1195_v3 = vpop.eup %1194  ;;  %s1425_s22 = smov 80   ;;  %s1426_s24 = smov 64  }
  0x33   : > { %449 = vadd.xlane.f32.xlu0 %v448_v1  ;;  %v452_v4 = vmul.f32 32.0, %v1195_v3  ;;  %vm456_vm1 = vweird.f32 %v1195_v3  ;;  %s1427_s13 = smov 56   ;;  %s1428_s15 = smov 40  }
  0x34   : > { %s1429_s1 = smov 48   ;;  %s1430_s3 = smov 8  }
  0x35   : > { %v453_v5 = vsub.f32 1.0, %v452_v4  ;;  %s1431_s17 = smov 16   ;;  %s1432_s19 = smov 24  }
  0x37   : > { %v454_v6 = vmul.f32 %v1195_v3, %v453_v5 }
  0x39   : > { %v455_v7 = vadd.f32 %v1195_v3, %v454_v6 }
  0x3b   : > { %v1597_v8 = vsel %vm456_vm1, %v1195_v3, %v455_v7 }
  0xa6   : > { %v450_v9 = vpop.xlane.xlu0 %449 }
  0xa7   : > { %v458_v10 = vmul.f32 %v1597_v8, %v450_v9 }
  0xa9   : > { %v459_v11 = vsub.f32 %v1593_v0, %v458_v10 }
  0xab   : > { %v460_v12 = vmul.f32 %v459_v11, %v459_v11 }
  0xad   : > { %v461_v13 = vsel %vm447_vm0, %v460_v12, 0.0 }
  0xae   : > { %462 = vadd.xlane.f32.xlu0 %v461_v13 }
 0x121   : > { %v463_v16 = vpop.xlane.xlu0 %462 }
 0x122   : > { %v464_v17 = vmul.f32 %v463_v16, %v1597_v8 }
 0x124   : > { %v465_v18 = vadd.f32 1e-05, %v464_v17 }
 0x126   : > { %1196 = vrsqrt.f32 %v465_v18  ;;  %vm472_vm3 = vweird.f32 %v465_v18 }
 0x12c   : > { %v1197_v19 = vpop.eup %1196 }
 0x12d   : > { %v467_v20 = vmul.f32 %v1197_v19, %v465_v18  ;;  %vm473_vm2 = vweird.f32 %v1197_v19 }
 0x12e   : > { %vm474_vm4 = vmor %vm472_vm3, %vm473_vm2 }
 0x12f   : > { %v468_v21 = vmul.f32 %v1197_v19, %v467_v20 }
 0x131   : > { %v469_v22 = vmul.f32 0.5, %v468_v21 }
 0x133   : > { %v470_v23 = vsub.f32 1.5, %v469_v22 }
 0x135   : > { %v471_v24 = vmul.f32 %v1197_v19, %v470_v23 }
 0x137   : > { %v475_v26 = vsel %vm474_vm4, %v1197_v19, %v471_v24 }
 0x138   : > { %v476_v27 = vmul.f32 %v475_v26, %v459_v11 }
 0x13a   : > { %v481_v29 = vmul.f32 %v1188_v25, %v476_v27 }
 0x13c   : > { %v486_v30 = vadd.f32 %v1189_v28, %v481_v29 }
 0x13e   : > { %v487_v31 = vpack.c.bf16 %v486_v30, %v486_v30 }
 0x140   : > { %1053 = vmatmul.msk.bf16.vlgmr.msra.gmra.mxu0 %vm447_vm0, %v487_v31 }
 0x1bd   : > { %v516_v32 = vpop.f32.mrf.mxu0 }
 0x1be   : > { %v520_v33 = vpack.c.bf16 %v516_v32, %v516_v32 }
 0x1c0   : > { %522 = vst.msk [vmem:[#allocation2] sm:$0xf] %vm521_vm5, %v520_v33 }
 0x1c5   : > { %v518_v34 = vpop.f32.mrf.mxu0 }
 0x1c7   : > { %v528_v35 = vld [vmem:[#allocation2] sm:$0xf] }
 0x1c8   : > { %v530_v36 = vunpack.c.l.b16 %v528_v35 }
 0x1ca   : > { %v1607_v37 = vpack.c.b16 %v530_v36, %v530_v36 }
 0x1cc   : > { %720 = vrot.lane.b32.xlu0 %v1607_v37, %s1419_s29  ;;  %592 = vrot.lane.b32.xlu2 %v1607_v37, %s1420_s16 }
 0x1cd   : > { %532 = vrot.lane.b32.xlu1 %v1607_v37, %s1421_s25 }
 0x1d4   : > { %722 = vrot.lane.b32.xlu2 %v1607_v37, %s1422_s30 }
 0x1d5   : > { %594 = vrot.lane.b32.xlu1 %v1607_v37, %s1423_s12 }
 0x1dc   : > { %656 = vrot.lane.b32.xlu2 %v1607_v37, %s1424_s14  ;;  %s1356_s14 = scalar_lea.hbm %s1719_s11, 16 }
 0x1dd   : > { %658 = vrot.lane.b32.xlu1 %v1607_v37, %s1425_s22 }
 0x226   : > { %v593_v38 = vpop.permute.xlu2 %592 }
 0x22e   : > { %v723_v41 = vpop.permute.xlu2 %722 }
 0x22f   : > { %v728_v44 = vsel %vm534_vm6, %v723_v41, 0 }
 0x236   : > { %v657_v47 = vpop.permute.xlu2 %656 }
 0x23e   : > { %v721_v48 = vpop.permute.xlu0 %720 }
 0x23f   : > { %v533_v39 = vpop.permute.xlu1 %532 }
 0x240   : > { %v539_v40 = vsel %vm534_vm6, %v533_v39, 0 }
 0x241   : > { %548 = vmatpush.bf16.xpose.msra.mxu1 %v539_v40 }
 0x247   : > { %v595_v42 = vpop.permute.xlu1 %594 }
 0x248   : > { %1054 = vmatmul.msk.bf16.vlgmr.msra.gmra.mxu1 %vm534_vm6, %v528_v35  ;;  %v600_v43 = vsel %vm534_vm6, %v595_v42, 0 }
 0x249   : > { %609 = vmatpush.bf16.xpose.msra.mxu3 %v600_v43 }
 0x24f   : > { %v659_v45 = vpop.permute.xlu1 %658 }
 0x250   : > { %1056 = vmatmul.msk.bf16.vlgmr.msra.gmra.mxu3 %vm534_vm6, %v593_v38  ;;  %v664_v46 = vsel %vm534_vm6, %v659_v45, 0 }
 0x251   : > { %737 = vmatpush.bf16.xpose.msrb.mxu3 %v728_v44  ;;  %673 = vmatpush.bf16.xpose.msrb.mxu0 %v664_v46 }
 0x258   : > { %1058 = vmatmul.msk.bf16.vlgmr.msrb.gmra.mxu0 %vm534_vm6, %v657_v47 }
 0x260   : > { %1060 = vmatmul.msk.bf16.vlgmr.msrb.gmra.mxu3 %vm534_vm6, %v721_v48 }
 0x2c5   : > { %v550_v52 = vpop.f32.mrf.mxu1 }
 0x2c6   : > { %v554_v53 = vsel %vm527_vm7, %v550_v52, -inf }
 0x2c7   : > { %v555_v54 = vsel %vm534_vm6, %v554_v53, -inf }
 0x2c8   : > { %556 = vmax.xlane.f32.xlu1 %v555_v54 }
 0x2cd   : > { %v552_v55 = vpop.f32.mrf.mxu1 }
 0x2d3   : > { %v611_v56 = vpop.f32.mrf.mxu3 }
 0x2d4   : > { %v615_v57 = vsel %vm527_vm7, %v611_v56, -inf }
 0x2d5   : > { %v675_v58 = vpop.f32.mrf.mxu0  ;;  %v616_v59 = vsel %vm534_vm6, %v615_v57, -inf }
 0x2d6   : > { %617 = vmax.xlane.f32.xlu2 %v616_v59  ;;  %v679_v60 = vsel %vm527_vm7, %v675_v58, -inf }
 0x2d7   : > { %v680_v63 = vsel %vm534_vm6, %v679_v60, -inf }
 0x2db   : > { %v613_v61 = vpop.f32.mrf.mxu3 }
 0x2dd   : > { %v677_v62 = vpop.f32.mrf.mxu0 }
 0x2de   : > { %681 = vmax.xlane.f32.xlu2 %v680_v63  ;;  %v1088_v62 = vld [vmem:[#allocation9 + $0x8] sm:$0xff]  ;;  %v1087_v63 = vld [vmem:[#allocation9] sm:$0xff] }
 0x2df   : > { %810 = vmatpush.bf16.msra.mxu0 %v1088_v62 }
 0x2e3   : > { %v739_v1 = vpop.f32.mrf.mxu3  ;;  %811 = vmatpush.bf16.msra.mxu0 %v1087_v63 }
 0x2e4   : > { %v743_v2 = vsel %vm527_vm7, %v739_v1, -inf }
 0x2e5   : > { %v744_v3 = vsel %vm534_vm6, %v743_v2, -inf }
 0x2e6   : > { %745 = vmax.xlane.f32.xlu0 %v744_v3 }
 0x2eb   : > { %v741_v4 = vpop.f32.mrf.mxu3 }
 0x2f6   : > { %567 = vrot.lane.b32.xlu2 %v1607_v37, %s1426_s24  ;;  %s438_s24 = sand.u32 1, %s1402_s18  }
 0x2fa   : > { %628 = vrot.lane.b32.xlu0 %v1607_v37, %s1427_s13  ;;  %s1043_s13 = sshll.u32 %s438_s24, 3 }
 0x2fb   : > { %s440_s26 = scalar_lea.vmem [#allocation12], %s1043_s13 }
 0x2fc   : > { %s928_s28 = sshll.u32 %s440_s26, 4  ;;  %s929_s28 = int_to_ptr.vmem [resolvable:$true] %s928_s28 }
 0x2fe   : > { %756 = vrot.lane.b32.xlu2 %v1607_v37, %s1428_s15  ;;  %s1082_s15 = sshll.u32 %s1514_s21, 3  ;;  %s916_s21 = scalar_lea.sflag [#allocation6], %s438_s24 }
 0x2ff   : > { %s926_s23 = scalar_lea.hbm %s1719_s11, %s1082_s15 }
 0x300   : > { %s930_s29 = sshll.u32 %s926_s23, 4  ;;  %s931_s29 = int_to_ptr.hbm [resolvable:$true] %s930_s29 }
 0x301   : > { %s1350_s16 = sshra.s32 %s931_s29, 4  ;;  %s1351_s16 = int_to_ptr.hbm [resolvable:$true] %s1350_s16 }
 0x302   : > { %692 = vrot.lane.b32.xlu0 %v1607_v37, %s1429_s1  ;;  %s1352_s25 = scalar_lea.hbm %s1351_s16, 8  ;;  %p1357_p3 = scmp.lt.s32.totalorder %s1351_s16, %s1719_s11 }
 0x303   : > { %p1353_p0 = scmp.ne.s32.totalorder %s1351_s16, %s1352_s25  ;;  %p1358_p4 = scmp.lt.s32.totalorder %s1356_s14, %s1352_s25 }
 0x305   : > { %p1354_p1 = pnand %p1353_p0, %p1531_p5  ;;  %p1359_p7 = por %p1358_p4, %p1357_p3 }
 0x307   : > { %p1355_p2 = pneg %p1354_p1 }
 0x309   : > { %p1360_p8 = pnand %p1359_p7, %p1355_p2 }
 0x33b   : > { %v557_v5 = vpop.xlane.xlu1 %556 }
 0x33c   : > { %v558_v6 = vsub.f32 %v554_v53, %v557_v5 }
 0x33e   : > { %v559_v7 = vmul.f32 1.442695, %v558_v6 }
 0x340   : > { %1198 = vpow2.f32 %v559_v7 }
 0x346   : > { %v1199_v9 = vpop.eup %1198 }
 0x347   : > { %v561_v10 = vsel %vm534_vm6, %v1199_v9, 0.0 }
 0x348   : > { %562 = vadd.xlane.f32.xlu1 %v561_v10 }
 0x349   : > { %v618_v11 = vpop.xlane.xlu2 %617 }
 0x34a   : > { %v619_v12 = vsub.f32 %v615_v57, %v618_v11 }
 0x34c   : > { %v620_v13 = vmul.f32 1.442695, %v619_v12 }
 0x34e   : > { %1200 = vpow2.f32 %v620_v13 }
 0x351   : > { %v682_v14 = vpop.xlane.xlu2 %681 }
 0x352   : > { %v683_v21 = vsub.f32 %v679_v60, %v682_v14 }
 0x354   : > { %v1201_v15 = vpop.eup %1200  ;;  %v684_v23 = vmul.f32 1.442695, %v683_v21 }
 0x355   : > { %v622_v16 = vsel %vm534_vm6, %v1201_v15, 0.0 }
 0x356   : > { %623 = vadd.xlane.f32.xlu1 %v622_v16  ;;  %v889_v16 = vld [vmem:[%s1717_s9] sm:$0xf] }
 0x359   : > { %v746_v17 = vpop.xlane.xlu0 %745  ;;  %v568_v18 = vpop.permute.xlu2 %567 }
 0x35a   : > { %v747_v19 = vsub.f32 %v743_v2, %v746_v17  ;;  %v574_v20 = vsel %vm572_vm8, %v568_v18, 0  ;;  %v898_v18 = vsel %vm572_vm8, %v889_v16, 0 }
 0x35b   : > { %583 = vmatpush.bf16.msra.mxu2 %v574_v20  ;;  %907 = vmatpush.bf16.msra.mxu3 %v898_v18 }
 0x35c   : > { %v748_v22 = vmul.f32 1.442695, %v747_v19 }
 0x35e   : > { %1202 = vpow2.f32 %v748_v22 }
 0x35f   : > { %1204 = vpow2.f32 %v684_v23 }
 0x361   : > { %v757_v35 = vpop.permute.xlu2 %756 }
 0x362   : > { %v762_v37 = vsel %vm572_vm8, %v757_v35, 0 }
 0x364   : > { %v1203_v24 = vpop.eup %1202 }
 0x365   : > { %v750_v25 = vsel %vm534_vm6, %v1203_v24, 0.0  ;;  %v1205_v26 = vpop.eup %1204 }
 0x366   : > { %751 = vadd.xlane.f32.xlu1 %v750_v25  ;;  %v686_v28 = vsel %vm534_vm6, %v1205_v26, 0.0 }
 0x36c   : > { %v629_v27 = vpop.permute.xlu0 %628 }
 0x36d   : > { %v634_v29 = vsel %vm572_vm8, %v629_v27, 0  ;;  %v1190_v27 = vld [vmem:[%s1713_s5] ss:$0 sm:$0xff] }
 0x36e   : > { %687 = vadd.xlane.f32.xlu1 %v686_v28  ;;  %643 = vmatpush.bf16.msrb.mxu2 %v634_v29  ;;  %v1191_v29 = vld [vmem:[#allocation10] ss:$0 sm:$0xff] }
 0x374   : > { %v693_v30 = vpop.permute.xlu0 %692 }
 0x375   : > { %v698_v31 = vsel %vm572_vm8, %v693_v30, 0 }
 0x376   : > { %707 = vmatpush.bf16.msrb.mxu1 %v698_v31 }
 0x3bb   : > { %v563_v32 = vpop.xlane.xlu1 %562 }
 0x3bc   : > { %1206 = vrcp.f32 %v563_v32 }
 0x3c2   : > { %v1207_v33 = vpop.eup %1206 }
 0x3c3   : > { %v565_v34 = vmul.f32 %v1207_v33, %v1199_v9  ;;  %v1192_v33 = vld [vmem:[%s1716_s8] ss:$0 sm:$0xff] }
 0x3c5   : > { %v566_v36 = vpack.c.bf16 %v565_v34, %v565_v34 }
 0x3c7   : > { %1055 = vmatmul.msk.bf16.vlgmr.msra.gmra.mxu2 %vm534_vm6, %v566_v36 }
 0x3c8   : > { %771 = vmatpush.bf16.msra.mxu2 %v762_v37 }
 0x3c9   : > { %v624_v38 = vpop.xlane.xlu1 %623 }
 0x3ca   : > { %1208 = vrcp.f32 %v624_v38 }
 0x3d0   : > { %v1209_v39 = vpop.eup %1208 }
 0x3d1   : > { %v626_v40 = vmul.f32 %v1209_v39, %v1201_v15  ;;  %v1090_v15 = vld [vmem:[%s1715_s7 + $0x8] sm:$0xff]  ;;  %v1193_v39 = vld [vmem:[%s1718_s10] ss:$0 sm:$0xff] }
 0x3d2   : > { %880 = vmatpush.bf16.msra.mxu1 %v1090_v15 }
 0x3d3   : > { %v627_v41 = vpack.c.bf16 %v626_v40, %v626_v40 }
 0x3d7   : > { %1057 = vmatmul.msk.bf16.vlgmr.msrb.gmra.mxu2 %vm534_vm6, %v627_v41 }
 0x3d9   : > { %v752_v42 = vpop.xlane.xlu1 %751 }
 0x3da   : > { %1210 = vrcp.f32 %v752_v42 }
 0x3e0   : > { %v1211_v43 = vpop.eup %1210 }
 0x3e1   : > { %v754_v44 = vmul.f32 %v1211_v43, %v1203_v24  ;;  %v688_v45 = vpop.xlane.xlu1 %687 }
 0x3e2   : > { %1212 = vrcp.f32 %v688_v45 }
 0x3e3   : > { %v755_v46 = vpack.c.bf16 %v754_v44, %v754_v44 }
 0x3e7   : > { %1061 = vmatmul.msk.bf16.vlgmr.msra.gmra.mxu2 %vm534_vm6, %v755_v46 }
 0x3e8   : > { %v1213_v47 = vpop.eup %1212 }
 0x3e9   : > { %v690_v48 = vmul.f32 %v1213_v47, %v1205_v26 }
 0x3eb   : > { %v691_v49 = vpack.c.bf16 %v690_v48, %v690_v48 }
 0x3ed   : > { %1059 = vmatmul.msk.bf16.vlgmr.msrb.gmra.mxu1 %vm534_vm6, %v691_v49 }
 0x44a   : > { %v585_v50 = vpop.f32.mrf.mxu2 }
 0x44b   : > { %v589_v51 = vpack.c.bf16 %v585_v50, %v585_v50 }
 0x44d   : > { %591 = vst.msk [vmem:[#allocation3] sm:$0xf] %vm590_vm9, %v589_v51 }
 0x452   : > { %v587_v52 = vpop.f32.mrf.mxu2 }
 0x45a   : > { %v645_v53 = vpop.f32.mrf.mxu2 }
 0x45b   : > { %v649_v54 = vpack.c.bf16 %v645_v53, %v645_v53 }
 0x45d   : > { %651 = vrot.lane.b32.xlu1 %v649_v54, %s1430_s3 }
 0x462   : > { %v647_v55 = vpop.f32.mrf.mxu2 }
 0x46a   : > { %v709_v56 = vpop.f32.mrf.mxu1  ;;  %v773_v57 = vpop.f32.mrf.mxu2 }
 0x46b   : > { %v713_v58 = vpack.c.bf16 %v709_v56, %v709_v56  ;;  %v777_v59 = vpack.c.bf16 %v773_v57, %v773_v57 }
 0x46d   : > { %715 = vrot.lane.b32.xlu2 %v713_v58, %s1431_s17  ;;  %779 = vrot.lane.b32.xlu0 %v777_v59, %s1432_s19 }
 0x472   : > { %v711_v60 = vpop.f32.mrf.mxu1  ;;  %v775_v61 = vpop.f32.mrf.mxu2 }
 0x4c7   : > { %v716_v2 = vpop.permute.xlu2 %715 }
 0x4cf   : > { %v652_v1 = vpop.permute.xlu1 %651 }
 0x4d0   : > { %655 = vst.msk [vmem:[#allocation3] sm:$0xf] %vm654_vm10, %v652_v1 }
 0x4d1   : > { %719 = vst.msk [vmem:[#allocation3] sm:$0xf] %vm718_vm11, %v716_v2 }
 0x4df   : > { %v780_v3 = vpop.permute.xlu0 %779 }
 0x4e0   : > { %783 = vst.msk [vmem:[#allocation3] sm:$0xf] %vm782_vm12, %v780_v3 }
 0x4e7   : > { %v784_v4 = vld [vmem:[#allocation3] sm:$0xf] }
 0x4e8   : > { %1070 = vmatmul.msk.bf16.vlgmr.msra.gmra.mxu0 %vm447_vm0, %v784_v4 }
 0x565   : > { %v813_v5 = vpop.f32.mrf.mxu0 }
 0x566   : > { %v817_v6 = vadd.f32 %v813_v5, %v1593_v0  ;;  %v1089_v0 = vld [vmem:[%s1715_s7] sm:$0xff] }
 0x567   : > { %881 = vmatpush.bf16.msra.mxu1 %v1089_v0 }
 0x568   : > { %v818_v7 = vsel %vm447_vm0, %v817_v6, 0.0 }
 0x569   : > { %819 = vadd.xlane.f32.xlu2 %v818_v7 }
 0x56d   : > { %v815_v9 = vpop.f32.mrf.mxu0 }
 0x5dc   : > { %v820_v10 = vpop.xlane.xlu2 %819 }
 0x5dd   : > { %v821_v11 = vmul.f32 %v820_v10, %v1597_v8 }
 0x5df   : > { %v822_v12 = vsub.f32 %v817_v6, %v821_v11 }
 0x5e1   : > { %v823_v13 = vmul.f32 %v822_v12, %v822_v12 }
 0x5e3   : > { %v824_v14 = vsel %vm447_vm0, %v823_v13, 0.0 }
 0x5e4   : > { %825 = vadd.xlane.f32.xlu0 %v824_v14 }
 0x657   : > { %v826_v17 = vpop.xlane.xlu0 %825 }
 0x658   : > { %v827_v19 = vmul.f32 %v826_v17, %v1597_v8 }
 0x65a   : > { %v828_v20 = vadd.f32 1e-05, %v827_v19 }
 0x65c   : > { %1214 = vrsqrt.f32 %v828_v20  ;;  %vm835_vm14 = vweird.f32 %v828_v20 }
 0x662   : > { %v1215_v21 = vpop.eup %1214 }
 0x663   : > { %v830_v22 = vmul.f32 %v1215_v21, %v828_v20  ;;  %vm836_vm13 = vweird.f32 %v1215_v21 }
 0x664   : > { %vm837_vm15 = vmor %vm835_vm14, %vm836_vm13 }
 0x665   : > { %v831_v23 = vmul.f32 %v1215_v21, %v830_v22 }
 0x667   : > { %v832_v24 = vmul.f32 0.5, %v831_v23 }
 0x669   : > { %v833_v25 = vsub.f32 1.5, %v832_v24 }
 0x66b   : > { %v834_v26 = vmul.f32 %v1215_v21, %v833_v25 }
 0x66d   : > { %v838_v28 = vsel %vm837_vm15, %v1215_v21, %v834_v26 }
 0x66e   : > { %v839_v8 = vmul.f32 %v838_v28, %v822_v12 }
 0x670   : > { %v844_v30 = vmul.f32 %v1190_v27, %v839_v8 }
 0x672   : > { %v849_v31 = vadd.f32 %v1191_v29, %v844_v30 }
 0x674   : > { %v850_v32 = vpack.c.bf16 %v849_v31, %v849_v31 }
 0x676   : > { %1079 = vmatmul.msk.bf16.vlgmr.msra.gmra.mxu1 %vm447_vm0, %v850_v32 }
 0x6f3   : > { %v883_v34 = vpop.f32.mrf.mxu1 }
 0x6f4   : > { %v884_v35 = vadd.f32 %v1192_v33, %v883_v34 }
 0x6f6   : > { %v887_v36 = vmax.f32 %v884_v35, 0.0 }
 0x6f8   : > { %v888_v37 = vpack.c.bf16 %v887_v36, %v887_v36 }
 0x6fa   : > { %1080 = vmatmul.msk.bf16.vlgmr.msra.gmra.mxu3 %vm534_vm6, %v888_v37 }
 0x6fb   : > { %v885_v38 = vpop.f32.mrf.mxu1 }
 0x77d   : > { %v909_v40 = vpop.f32.mrf.mxu3 }
 0x77e   : > { %v910_v41 = vadd.f32 %v1193_v39, %v909_v40 }
 0x780   : > { %v913_v42 = vadd.f32 %v910_v41, %v817_v6 }
 0x782   : > { %914 = vst.msk [vmem:[%s440_s26] sm:$0xff] %vm447_vm0, %v913_v42 }
 0x783   : > { %1363 = shalt.err (!%p1360_p8)
}
 0x784   : > { %1107 = dma.vmem_to_hbm [thread:$0]  (%p1531_p5), %s929_s28, 128, %s931_s29, %s916_s21  }
 0x785   : > { %v911_v43 = vpop.f32.mrf.mxu3 }
 0x786 PF: > { %s1738_s24 = sld [smem:[#allocation17_spill]]  ;;  %p1134_p9 = scmp.ge.s32.totalorder %s1410_s20, 2 }
 0x788   : > { %p1123_p10 = pnand %p1134_p9, %p1535_p6 }
 0x78a   : > { %p1124_p11 = pneg %p1123_p10 }
 0x78c   : > { %s942_s1 = sand.u32 1, %s1738_s24  }
 0x78d   : > { %s943_s3 = scalar_lea.sflag [#allocation6], %s942_s1 }
 0x78e   : > { %1393 = dma.done.wait (%p1124_p11), %s943_s3, 128  }
 0x78f   : > { %1395 = vsyncadd (%p1124_p11), %s943_s3, 4294967168  ;;  %s1740_s20 = sld [smem:[#allocation19_spill]]  ;;  %s1743_s17 = smov %s1402_s18 }
 0x790   : > { %s1741_s19 = sld [smem:[#allocation18_spill]] }
 0x791   : > { %s1742_s23 = sld [smem:[#allocation20_spill]] }
 0x795   : > { %p24_p12 = scmp.ge.s32.totalorder %s1740_s20, 4  }
 0x796   : > { %s1744_s18 = smov %s1741_s19 }
 0x797   : > { %s1745_s19 = smov %s1742_s23  ;;  %26 = sbr.rel (!%p24_p12) target bundleno = 9 (0x9), region = 116 }
 0x79c   :  { %949 = vsyncpa [#allocation5], 1 }
 0x79d   :  { %951 = vsyncpa [#allocation5 + $0x1], 1 }
 0x79e   :  { %952 = vsyncpa [#allocation8], 1 }
 0x79f   :  { %953 = vsyncpa [#allocation11], 1 }
 0x7a0   :  { %954 = vsyncpa [#allocation6], 1 }
 0x7a1   :  { %956 = vsyncpa [#allocation6 + $0x1], 1 }

</bundles_post_ra>
